<compile_context>
chip_gen: v7x
topology: tpu7x:2x2x1
jax: 0.10.0
libtpu: 0.0.40
codegen_flags: <defaults>
</compile_context>

<pallas_src>
import jax
import jax.numpy as jnp
from jax import lax
from jax.experimental import pallas as pl
from jax.experimental.pallas import tpu as pltpu

_EPS = 1e-5


# ---------------------------------------------------------------------------
# generation-aware budgets
# ---------------------------------------------------------------------------
def _vmem_limit_bytes():
    cap = None
    try:
        cap = getattr(pltpu.get_tpu_info(), "vmem_capacity_bytes", None)
    except Exception:
        cap = None
    if cap is not None and cap >= 100 * 1024 * 1024:   # v5e / v6e: 128 MiB VMEM
        return 64 * 1024 * 1024
    return 48 * 1024 * 1024                            # v7x (64 MiB) / unknown


def _tile_target_bytes(vmem_limit):
    # per-operand tile-size target for the tiled fallback path
    return 4 * 1024 * 1024 if vmem_limit >= 64 * 1024 * 1024 else 2 * 1024 * 1024


# ---------------------------------------------------------------------------
# block-size selection helpers
# ---------------------------------------------------------------------------
def _cb_candidates(C, itemsize):
    """Legal channel-block sizes, descending.  cb must be a multiple of the
    sublane quantum for the dtype (8 f32 / 16 bf16 / 32 int8) or equal C."""
    q = max(8, 32 // max(1, itemsize))
    for quantum in (q, 8):
        if C % quantum == 0:
            return [b for b in range(C, quantum - 1, -quantum) if C % b == 0]
    return [C]  # full extent is always layout-legal


def _pick_cb(C, itemsize, *, fits=None, cap=None, prefer_split=True):
    """Pick a channel block.  Prefer the largest cb that still gives >= 2
    channel blocks (so the 'parallel' C axis feeds both v7x TensorCores)."""
    cands = _cb_candidates(C, itemsize)
    if cap is not None:
        capped = [b for b in cands if b <= cap]
        cands = capped if capped else [cands[-1]]
    if fits is not None:
        fitting = [b for b in cands if fits(b)]
        if not fitting:
            return None
        cands = fitting
    if prefer_split:
        multi = [b for b in cands if C // b >= 2]
        if multi:
            return multi[0]
    return cands[0]


def _pick_hw_block(HW, cb, itemsize, tile_target):
    """Return (hwb, n_hw_blocks, need_mask) for the tiled fallback."""
    hwb_max = max(128, (tile_target // max(1, cb * itemsize)) // 128 * 128)
    if HW <= hwb_max:
        return HW, 1, False               # full extent: always layout-legal
    b = hwb_max                           # try an exact 128-multiple divisor
    while b >= 128:
        if HW % b == 0:
            return b, HW // b, False
        b -= 128
    n_hw = -(-HW // hwb_max)              # cdiv -> masked tail
    return hwb_max, n_hw, (HW % hwb_max != 0)


# ---------------------------------------------------------------------------
# kernels
# ---------------------------------------------------------------------------
def _make_fused_kernel(count):
    inv_count = 1.0 / float(count)

    def kernel(x_ref, g_ref, b_ref, o_ref):
        # x_ref/o_ref: (N, cb, HW)   g_ref/b_ref: (cb, 1)
        x = x_ref[...].astype(jnp.float32)
        # true two-pass mean/var on the VMEM-resident slab (no cancellation)
        mean = jnp.sum(jnp.sum(x, axis=-1, keepdims=True),
                       axis=0, keepdims=True) * inv_count          # (1, cb, 1)
        xc = x - mean
        var = jnp.sum(jnp.sum(xc * xc, axis=-1, keepdims=True),
                      axis=0, keepdims=True) * inv_count            # (1, cb, 1)
        scale = lax.rsqrt(var + _EPS) * g_ref[...]                  # (1, cb, 1)
        y = xc * scale + b_ref[...]
        o_ref[...] = jnp.maximum(y, 0.0).astype(o_ref.dtype)

    return kernel


def _make_stats_kernel(HW, hwb, need_mask):
    def kernel(x_ref, sum_ref, sq_ref):
        # x_ref: (cb, hwb)   sum_ref/sq_ref: resident (cb, 1) accumulators
        @pl.when(jnp.logical_and(pl.program_id(1) == 0, pl.program_id(2) == 0))
        def _():
            sum_ref[...] = jnp.zeros_like(sum_ref)
            sq_ref[...] = jnp.zeros_like(sq_ref)

        x = x_ref[...].astype(jnp.float32)
        if need_mask:  # ragged HW: keep padded lanes out of the statistics
            col = pl.program_id(2) * hwb + lax.broadcasted_iota(
                jnp.int32, x.shape, 1)
            x = jnp.where(col < HW, x, 0.0)
        sum_ref[...] += jnp.sum(x, axis=-1, keepdims=True)
        sq_ref[...] += jnp.sum(x * x, axis=-1, keepdims=True)

    return kernel


def _make_apply_kernel(count):
    inv_count = 1.0 / float(count)

    def kernel(x_ref, csum_ref, csq_ref, g_ref, b_ref, o_ref):
        # per-channel affine recomputed from (cb,1) stats blocks (few VPU/EUP
        # ops on a single vreg; avoids any HLO glue between the two passes).
        # TODO(synk): E[x^2]-E[x]^2 can cancel when |mean| >> std; a shifted /
        # Welford accumulation in the stats pass would be more robust.
        mean = csum_ref[...] * inv_count
        var = jnp.maximum(csq_ref[...] * inv_count - mean * mean, 0.0)
        scale = lax.rsqrt(var + _EPS) * g_ref[...]
        bias = b_ref[...] - mean * scale
        y = x_ref[...].astype(jnp.float32) * scale + bias
        o_ref[...] = jnp.maximum(y, 0.0).astype(o_ref.dtype)

    return kernel


# ---------------------------------------------------------------------------
# wrapper
# ---------------------------------------------------------------------------
def bn_scale_relu(x_nchw, gamma, beta, alpha, shift, *, force_tiled=False):
    """Fused BatchNorm2d (batch stats) + scale_and_shift + ReLU.

    x_nchw: (N, C, H, W); gamma/beta: (C,); alpha/shift: scalars (or (C,)).
    Returns an array with the same shape and dtype as x_nchw.
    """
    N, C, H, W = x_nchw.shape
    HW = H * W
    count = N * HW
    itemsize = jnp.dtype(x_nchw.dtype).itemsize
    n_elems = N * C * HW

    x3d = x_nchw.reshape(N, C, HW)  # free reshape; no NCHW transpose anywhere

    # Fold scale_and_shift into the BN affine: y = x_hat * g_eff + b_eff.
    a = jnp.asarray(alpha, jnp.float32).reshape(-1)
    s = jnp.asarray(shift, jnp.float32).reshape(-1)
    g_eff = (gamma.astype(jnp.float32) * a).reshape(C, 1)
    b_eff = (beta.astype(jnp.float32) * a + s).reshape(C, 1)

    vmem_limit = _vmem_limit_bytes()

    # ---------------- fused single-read path -------------------------------
    if not force_tiled:
        slab_f32 = lambda b: N * b * HW * 4
        cb = _pick_cb(C, itemsize,
                      fits=lambda b: 8 * slab_f32(b) + (2 << 20) <= vmem_limit)
        if cb is not None:
            grid = (C // cb,)
            x_spec = pl.BlockSpec((N, cb, HW), lambda c: (0, c, 0))
            ch_spec = pl.BlockSpec((cb, 1), lambda c: (c, 0))
            out3d = pl.pallas_call(
                _make_fused_kernel(count),
                out_shape=jax.ShapeDtypeStruct((N, C, HW), x_nchw.dtype),
                grid=grid,
                in_specs=[x_spec, ch_spec, ch_spec],
                out_specs=x_spec,
                compiler_params=pltpu.CompilerParams(
                    dimension_semantics=("parallel",),
                    vmem_limit_bytes=vmem_limit),
                cost_estimate=pl.CostEstimate(
                    flops=7 * n_elems, transcendentals=C,
                    bytes_accessed=2 * n_elems * itemsize + 16 * C),
            )(x3d, g_eff, b_eff)
            return out3d.reshape(N, C, H, W)

    # ---------------- tiled two-pass fallback -------------------------------
    tile_target = _tile_target_bytes(vmem_limit)
    cb = _pick_cb(C, itemsize, cap=64)
    hwb, n_hw, need_mask = _pick_hw_block(HW, cb, itemsize, tile_target)
    grid = (C // cb, N, n_hw)           # reduction axes (N, HW) last

    x_spec = pl.BlockSpec((None, cb, hwb), lambda c, n, hw: (n, c, hw))
    ch_spec = pl.BlockSpec((cb, 1), lambda c, n, hw: (c, 0))

    # pass 1: per-channel sum / sum of squares
    csum, csq = pl.pallas_call(
        _make_stats_kernel(HW, hwb, need_mask),
        out_shape=(jax.ShapeDtypeStruct((C, 1), jnp.float32),
                   jax.ShapeDtypeStruct((C, 1), jnp.float32)),
        grid=grid,
        in_specs=[x_spec],
        out_specs=(ch_spec, ch_spec),
        compiler_params=pltpu.CompilerParams(
            dimension_semantics=("parallel", "arbitrary", "arbitrary"),
            vmem_limit_bytes=vmem_limit),
        cost_estimate=pl.CostEstimate(
            flops=3 * n_elems, transcendentals=0,
            bytes_accessed=n_elems * itemsize + 8 * C),
    )(x3d)

    # pass 2: y = relu(x * scale_c + bias_c), affine computed in-kernel
    out3d = pl.pallas_call(
        _make_apply_kernel(count),
        out_shape=jax.ShapeDtypeStruct((N, C, HW), x_nchw.dtype),
        grid=grid,
        in_specs=[x_spec, ch_spec, ch_spec, ch_spec, ch_spec],
        out_specs=x_spec,
        compiler_params=pltpu.CompilerParams(
            dimension_semantics=("parallel", "parallel", "parallel"),
            vmem_limit_bytes=vmem_limit),
        cost_estimate=pl.CostEstimate(
            flops=4 * n_elems, transcendentals=C,
            bytes_accessed=2 * n_elems * itemsize + 32 * C),
    )(x3d, csum, csq, g_eff, b_eff)

    return out3d.reshape(N, C, H, W)


# ---------------------------------------------------------------------------
# pure-JAX reference
# ---------------------------------------------------------------------------
def _reference(x_nchw, gamma, beta, alpha, shift):
    x = x_nchw.astype(jnp.float32)
    mean = jnp.mean(x, axis=(0, 2, 3), keepdims=True)
    var = jnp.mean((x - mean) ** 2, axis=(0, 2, 3), keepdims=True)
    y = (x - mean) * lax.rsqrt(var + _EPS)
    y = y * gamma.reshape(1, -1, 1, 1) + beta.reshape(1, -1, 1, 1)
    y = y * jnp.asarray(alpha, jnp.float32).reshape(-1)[0] \
          + jnp.asarray(shift, jnp.float32).reshape(-1)[0]
    return jnp.maximum(y, 0.0).astype(x_nchw.dtype)


if __name__ == "__main__":
    key = jax.random.PRNGKey(0)
    N, C, H, W = 2, 4, 16, 16

    x = jax.random.normal(key, (N, C, H, W), dtype=jnp.float32)

    # Deterministic parameter init per the module __init__:
    gamma = jnp.ones((C,), jnp.float32)    # BatchNorm2d.weight
    beta = jnp.zeros((C,), jnp.float32)    # BatchNorm2d.bias
    alpha = jnp.ones((1,), jnp.float32)    # scale_and_shift.alpha
    shift = jnp.zeros((1,), jnp.float32)   # scale_and_shift.beta

    ref = _reference(x, gamma, beta, alpha, shift)

    # fused single-read path (used for shapes that fit in VMEM)
    out = jax.block_until_ready(bn_scale_relu(x, gamma, beta, alpha, shift))
    assert out.shape == x.shape and out.dtype == x.dtype
    assert jnp.allclose(out, ref, atol=1e-4, rtol=1e-4), "fused mismatch"

    # also exercise the tiled two-pass fallback path
    out_t = jax.block_until_ready(
        bn_scale_relu(x, gamma, beta, alpha, shift, force_tiled=True))
    assert jnp.allclose(out_t, ref, atol=1e-4, rtol=1e-4), "tiled mismatch"

    print("KERNEL_OK")
</pallas_src>

<mosaic_0001>
module attributes {stable_mosaic.version = 11 : i64} {
  func.func @kernel(%arg0: i32, %arg1: memref<2x4x256xf32, #tpu.memory_space<vmem>>, %arg2: memref<4x1xf32, #tpu.memory_space<vmem>>, %arg3: memref<4x1xf32, #tpu.memory_space<vmem>>, %arg4: memref<2x4x256xf32, #tpu.memory_space<vmem>>) attributes {dimension_semantics = [#tpu.dimension_semantics<parallel>], iteration_bounds = array<i64: 1>, scalar_prefetch = 0 : i64, scratch_operands = 0 : i64, tpu.core_type = #tpu.core_type<tc>, window_params = [{transform_indices = @transform_0, window_bounds = array<i64: 2, 4, 256>}, {transform_indices = @transform_1, window_bounds = array<i64: 4, 1>}, {transform_indices = @transform_2, window_bounds = array<i64: 4, 1>}, {transform_indices = @transform_3, window_bounds = array<i64: 2, 4, 256>}]} {
    %c0 = arith.constant 0 : index
    %c0_0 = arith.constant 0 : index
    %c0_1 = arith.constant 0 : index
    %0 = vector.load %arg1[%c0, %c0_0, %c0_1] : memref<2x4x256xf32, #tpu.memory_space<vmem>>, vector<2x4x256xf32>
    %cst = arith.constant dense<0.000000e+00> : vector<2x4xf32>
    %1 = vector.multi_reduction <add>, %0, %cst [2] : vector<2x4x256xf32> to vector<2x4xf32>
    %2 = vector.shape_cast %1 : vector<2x4xf32> to vector<2x4x1xf32>
    %cst_2 = arith.constant dense<0.000000e+00> : vector<4x1xf32>
    %3 = vector.multi_reduction <add>, %2, %cst_2 [0] : vector<2x4x1xf32> to vector<4x1xf32>
    %4 = vector.shape_cast %3 : vector<4x1xf32> to vector<1x4x1xf32>
    %cst_3 = arith.constant 0.001953125 : f32
    %5 = vector.broadcast %cst_3 : f32 to vector<1x4x1xf32>
    %6 = arith.mulf %4, %5 : vector<1x4x1xf32>
    %7 = vector.broadcast %6 : vector<1x4x1xf32> to vector<2x4x256xf32>
    %8 = arith.subf %0, %7 : vector<2x4x256xf32>
    %9 = arith.mulf %8, %8 : vector<2x4x256xf32>
    %cst_4 = arith.constant dense<0.000000e+00> : vector<2x4xf32>
    %10 = vector.multi_reduction <add>, %9, %cst_4 [2] : vector<2x4x256xf32> to vector<2x4xf32>
    %11 = vector.shape_cast %10 : vector<2x4xf32> to vector<2x4x1xf32>
    %cst_5 = arith.constant dense<0.000000e+00> : vector<4x1xf32>
    %12 = vector.multi_reduction <add>, %11, %cst_5 [0] : vector<2x4x1xf32> to vector<4x1xf32>
    %13 = vector.shape_cast %12 : vector<4x1xf32> to vector<1x4x1xf32>
    %cst_6 = arith.constant 0.001953125 : f32
    %14 = vector.broadcast %cst_6 : f32 to vector<1x4x1xf32>
    %15 = arith.mulf %13, %14 : vector<1x4x1xf32>
    %cst_7 = arith.constant 9.99999974E-6 : f32
    %16 = vector.broadcast %cst_7 : f32 to vector<1x4x1xf32>
    %17 = arith.addf %15, %16 : vector<1x4x1xf32>
    %18 = math.rsqrt %17 : vector<1x4x1xf32>
    %c0_8 = arith.constant 0 : index
    %c0_9 = arith.constant 0 : index
    %19 = vector.load %arg2[%c0_8, %c0_9] : memref<4x1xf32, #tpu.memory_space<vmem>>, vector<4x1xf32>
    %20 = vector.shape_cast %19 : vector<4x1xf32> to vector<1x4x1xf32>
    %21 = arith.mulf %18, %20 : vector<1x4x1xf32>
    %22 = vector.broadcast %21 : vector<1x4x1xf32> to vector<2x4x256xf32>
    %23 = arith.mulf %8, %22 : vector<2x4x256xf32>
    %c0_10 = arith.constant 0 : index
    %c0_11 = arith.constant 0 : index
    %24 = vector.load %arg3[%c0_10, %c0_11] : memref<4x1xf32, #tpu.memory_space<vmem>>, vector<4x1xf32>
    %25 = vector.shape_cast %24 : vector<4x1xf32> to vector<1x4x1xf32>
    %26 = vector.broadcast %25 : vector<1x4x1xf32> to vector<2x4x256xf32>
    %27 = arith.addf %23, %26 : vector<2x4x256xf32>
    %cst_12 = arith.constant 0.000000e+00 : f32
    %28 = vector.broadcast %cst_12 : f32 to vector<2x4x256xf32>
    %29 = arith.maximumf %27, %28 : vector<2x4x256xf32>
    %c0_13 = arith.constant 0 : index
    %c0_14 = arith.constant 0 : index
    %c0_15 = arith.constant 0 : index
    %30 = vector.load %arg4[%c0_13, %c0_14, %c0_15] : memref<2x4x256xf32, #tpu.memory_space<vmem>>, vector<2x4x256xf32>
    tpu.vector_store %arg4[%c0_13, %c0_14, %c0_15], %29 {strides = array<i32>} : memref<2x4x256xf32, #tpu.memory_space<vmem>>, vector<2x4x256xf32>,
    return
  }
  func.func @transform_0(%arg0: i32) -> (i32, i32, i32) {
    %c0_i32 = arith.constant 0 : i32
    %c0_i32_0 = arith.constant 0 : i32
    %c0_i32_1 = arith.constant 0 : i32
    return %c0_i32, %arg0, %c0_i32_0 : i32, i32, i32
  }
  func.func @transform_1(%arg0: i32) -> (i32, i32) {
    %c0_i32 = arith.constant 0 : i32
    %c0_i32_0 = arith.constant 0 : i32
    return %arg0, %c0_i32 : i32, i32
  }
  func.func @transform_2(%arg0: i32) -> (i32, i32) {
    %c0_i32 = arith.constant 0 : i32
    %c0_i32_0 = arith.constant 0 : i32
    return %arg0, %c0_i32 : i32, i32
  }
  func.func @transform_3(%arg0: i32) -> (i32, i32, i32) {
    %c0_i32 = arith.constant 0 : i32
    %c0_i32_0 = arith.constant 0 : i32
    %c0_i32_1 = arith.constant 0 : i32
    return %c0_i32, %arg0, %c0_i32_0 : i32, i32, i32
  }
}

</mosaic_0001>

<bundles_post_ra>
// kernel: tpu_custom_call.1
= control target key start
LH: loop header
LB: loop body
LE: loop exit
PB: predicated region body
PF: predicated region fallthrough
CT: control target
= control target key end

     0   :  { %8 = vsyncpa [#allocation3], 0  ;;  %s273_s0 = inlined_call_operand.hbm [shape: f32[2,4,256], index: 0, kind: input, shape index: {}]   ;;  %s274_s1 = inlined_call_operand.vmem [shape: f32[4,1], index: 1, kind: input, shape index: {}]   ;;  %s275_s2 = inlined_call_operand.vmem [shape: f32[4,1], index: 2, kind: input, shape index: {}]   ;;  %s276_s3 = inlined_call_operand.hbm [shape: f32[2,4,256], index: 3, kind: output, shape index: {}]  }
   0x1   :  { %9 = vsyncpa [#allocation4], 0  ;;  %s199_s12 = smov [#allocation2]   ;;  %s151_s16 = scalar_lea.hbm %s273_s0, 256 }
   0x2   :  { %s15_s13 = sshll.u32 %s199_s12, 4  ;;  %p152_p0 = scmp.ne.s32.totalorder %s273_s0, %s151_s16  ;;  %s16_s13 = int_to_ptr.vmem [resolvable:$true] %s15_s13 }
   0x3   :  { %p155_p1 = scmp.lt.u32.totalorder %s151_s16, %s273_s0 }
   0x5   :  { %p157_p2 = pnand %p155_p1, %p152_p0 }
   0x7   :  { %160 = shalt.err (!%p157_p2)
}
   0x8   :  { %s161_s21 = scalar_lea.vmem %s16_s13, 256  ;;  %p166_p4 = scmp.lt.s32.totalorder %s16_s13, %s16_s13 }
   0x9   :  { %p162_p3 = scmp.ne.s32.totalorder %s16_s13, %s161_s21  ;;  %p167_p5 = scmp.lt.s32.totalorder %s161_s21, %s161_s21 }
   0xb   :  { %p168_p6 = por %p167_p5, %p166_p4 }
   0xd   :  { %p169_p7 = pnand %p168_p6, %p162_p3 }
   0xf   :  { %172 = shalt.err (!%p169_p7)
}
  0x10   :  { %s200_s22 = smov 128   ;;  %s201_s23 = smov 8  }
  0x11   :  { %21 = dma.hbm_to_vmem [thread:$0]  %s273_s0, 256, %s16_s13, [#allocation3], %s200_s22, %s200_s22, %s201_s23  }
  0x12   :  { %195 = dma.done.wait [#allocation3], 256  }
  0x13   :  { %196 = vsyncadd [#allocation3], 4294967040  ;;  %vm37_vm0 = vcmask 1043456   ;;  %v29_v0 = vld [vmem:[#allocation2] sm:$0xff]  ;;  %v30_v1 = vld [vmem:[#allocation2 + $0x8] sm:$0xff]  ;;  %v56_v12 = vlaneseq  ;;  %v203_v35 = vmov 0  }
  0x14   :  { %v33_v2 = vcombine.high %v29_v0, %v29_v0  ;;  %v38_v3 = vsel %vm37_vm0, %v29_v0, 0.0  ;;  %v34_v4 = vcombine.high %v30_v1, %v30_v1  ;;  %v43_v6 = vsel %vm37_vm0, %v30_v1, 0.0  ;;  %145 = vset.pattern.permute.xlu0 %v203_v35  ;;  %146 = vset.pattern.permute.xlu1 %v203_v35  ;;  %v103_v36 = vld [vmem:[%s275_s2] sm:$0xf]  ;;  %s204_s2 = smov [#allocation5]  }
  0x15   :  { %v202_v10 = vmov 839922192   ;;  %v57_v15 = vshrl.u32 %v56_v12, 7  ;;  %v87_v44 = vld [vmem:[%s274_s1] sm:$0xf]  ;;  %s127_s29 = sshll.u32 %s204_s2, 4  ;;  %s128_s29 = int_to_ptr.vmem [resolvable:$true] %s127_s29 }
  0x16   :  { %v39_v5 = vsel %vm37_vm0, %v33_v2, 0.0  ;;  %v44_v7 = vsel %vm37_vm0, %v34_v4, 0.0  ;;  %v54_v11 = vunpack.c.l.s4 %v202_v10  ;;  %s173_s30 = scalar_lea.vmem %s128_s29, 256  ;;  %p178_p9 = scmp.lt.s32.totalorder %s128_s29, %s128_s29 }
  0x17   :  { %v40_v8 = vadd.f32 %v39_v5, %v38_v3  ;;  %v45_v9 = vadd.f32 %v44_v7, %v43_v6  ;;  %p174_p8 = scmp.ne.s32.totalorder %s128_s29, %s173_s30  ;;  %p179_p10 = scmp.lt.s32.totalorder %s173_s30, %s173_s30 }
  0x18   :  { %v55_v14 = vunpack.c.0.s8 %v54_v11 }
  0x19   :  { %41 = vadd.xlane.f32.xlu0 %v40_v8  ;;  %p180_p11 = por %p179_p10, %p178_p9 }
  0x1a   :  { %v58_v19 = vsub.s32 %v55_v14, %v57_v15 }
  0x1b   :  { %p181_p12 = pnand %p180_p11, %p174_p8 }
  0x1d   :  { %46 = vadd.xlane.f32.xlu0 %v45_v9 }
  0xa6   :  { %v42_v13 = vpop.xlane.xlu0 %41 }
  0xa7   :  { %v48_v17 = vsel %vm37_vm0, %v42_v13, 0.0 }
  0xaa   :  { %v47_v16 = vpop.xlane.xlu0 %46 }
  0xab   :  { %v49_v18 = vsel %vm37_vm0, %v47_v16, 0.0 }
  0xac   :  { %v50_v20 = vadd.f32 %v49_v18, %v48_v17 }
  0xae   :  { %v51_v21 = vmul.f32 0.001953125, %v50_v20 }
  0xb0   :  { %v59_v22 = vrot.slane %v51_v21, %v58_v19 }
  0xb2   :  { %v62_v23 = vsub.f32 %v30_v1, %v59_v22  ;;  %v61_v24 = vsub.f32 %v29_v0, %v59_v22 }
  0xb4   :  { %v63_v25 = vmul.f32 %v61_v24, %v61_v24  ;;  %v64_v26 = vmul.f32 %v62_v23, %v62_v23 }
  0xb6   :  { %v67_v27 = vcombine.high %v63_v25, %v63_v25  ;;  %v68_v28 = vcombine.high %v64_v26, %v64_v26  ;;  %v71_v29 = vsel %vm37_vm0, %v63_v25, 0.0  ;;  %v76_v33 = vsel %vm37_vm0, %v64_v26, 0.0 }
  0xb8   :  { %v72_v30 = vsel %vm37_vm0, %v67_v27, 0.0  ;;  %v77_v32 = vsel %vm37_vm0, %v68_v28, 0.0 }
  0xb9   :  { %v73_v31 = vadd.f32 %v72_v30, %v71_v29  ;;  %v78_v34 = vadd.f32 %v77_v32, %v76_v33 }
  0xbb   :  { %74 = vadd.xlane.f32.xlu1 %v73_v31 }
  0xbf   :  { %79 = vadd.xlane.f32.xlu1 %v78_v34 }
  0xd0   :  { %106 = vperm.xlu1 %146, %v103_v36  }
 0x148   :  { %v75_v37 = vpop.xlane.xlu1 %74 }
 0x149   :  { %v81_v39 = vsel %vm37_vm0, %v75_v37, 0.0 }
 0x14c   :  { %v80_v38 = vpop.xlane.xlu1 %79 }
 0x14d   :  { %v82_v40 = vsel %vm37_vm0, %v80_v38, 0.0 }
 0x14e   :  { %v83_v41 = vadd.f32 %v82_v40, %v81_v39 }
 0x150   :  { %v84_v42 = vmul.f32 0.001953125, %v83_v41  ;;  %v107_v47 = vpop.permute.xlu1 %106 }
 0x151   :  { %v114_v50 = vrot.slane %v107_v47, %v58_v19 }
 0x152   :  { %v85_v43 = vadd.f32 1e-05, %v84_v42 }
 0x154   :  { %149 = vrsqrt.f32 %v85_v43 }
 0x15e   :  { %v150_v45 = vpop.eup %149 }
 0x15f   :  { %v88_v46 = vmul.f32 %v150_v45, %v87_v44 }
 0x161   :  { %91 = vperm.xlu0 %145, %v88_v46  }
 0x1e0   :  { %v92_v48 = vpop.permute.xlu0 %91 }
 0x1e1   :  { %v99_v49 = vrot.slane %v92_v48, %v58_v19 }
 0x1e3   :  { %v101_v51 = vmul.f32 %v99_v49, %v61_v24  ;;  %v102_v52 = vmul.f32 %v99_v49, %v62_v23 }
 0x1e5   :  { %v116_v53 = vadd.f32 %v114_v50, %v101_v51  ;;  %v117_v54 = vadd.f32 %v114_v50, %v102_v52 }
 0x1e7   :  { %v118_v55 = vmax.f32 %v116_v53, 0.0  ;;  %v119_v56 = vmax.f32 %v117_v54, 0.0 }
 0x1e9   :  { %120 = vst [vmem:[#allocation5] sm:$0xff] %v118_v55  ;;  %121 = vst [vmem:[#allocation5 + $0x8] sm:$0xff] %v119_v56 }
 0x1ea   :  { %184 = shalt.err (!%p181_p12)
}
 0x1eb   :  { %s185_s5 = scalar_lea.hbm %s276_s3, 256 }
 0x1ec   :  { %p186_p13 = scmp.ne.s32.totalorder %s276_s3, %s185_s5  ;;  %p189_p0 = scmp.lt.u32.totalorder %s185_s5, %s276_s3 }
 0x1ee   :  { %p191_p1 = pnand %p189_p0, %p186_p13 }
 0x1f0   :  { %194 = shalt.err (!%p191_p1)
}
 0x1f1   :  { %133 = dma.vmem_to_hbm [thread:$0]  %s128_s29, 256, %s276_s3, [#allocation4], %s200_s22, %s200_s22, %s201_s23  }
 0x1f2   :  { %197 = dma.done.wait [#allocation4], 256  }
 0x1f3   :  { %198 = vsyncadd [#allocation4], 4294967040 }
 0x1f4   :  { %137 = vsyncpa [#allocation3], 1 }
 0x1f5   :  { %138 = vsyncpa [#allocation4], 1 }

</bundles_post_ra>
